<compile_context>
chip_gen: v7x
topology: tpu7x:2x2x1
jax: 0.10.0
libtpu: 0.0.40
codegen_flags: <defaults>
</compile_context>

<pallas_src>
import jax
import jax.numpy as jnp
from jax.experimental import pallas as pl
from jax.experimental.pallas import tpu as pltpu


# Matrices at or below this size get a single full-array block (block dims
# equal to the full array dims, so no (8,128) divisibility concern).
_SMALL_SINGLE_BLOCK_BYTES = 1 * 1024 * 1024
# Minimum number of row panels once we do tile (pipelining + megacore).
_MIN_PANELS = 8
# Never exceed this many rows per panel.
_MAX_PANEL_ROWS = 2048


def _vmem_params():
    """(per-tile budget bytes, scoped vmem_limit_bytes), generation aware."""
    tile_budget = 8 * 1024 * 1024      # conservative: fits v7x's 64 MiB VMEM
    vmem_limit = 48 * 1024 * 1024
    try:
        info = pltpu.get_tpu_info()
        cap = getattr(info, "vmem_capacity_bytes", None)
        if cap is not None and cap >= 96 * 1024 * 1024:
            # v5e / v6e: 128 MiB VMEM -> bigger tiles, fewer grid steps.
            tile_budget = 16 * 1024 * 1024
            vmem_limit = 96 * 1024 * 1024
    except Exception:
        pass
    return tile_budget, vmem_limit


def _sublane_multiple(dtype) -> int:
    """Min second-minor tile multiple for dense layouts: 8 f32, 16 bf16, 32 int8."""
    itemsize = jnp.dtype(dtype).itemsize
    return max(8, 32 // max(1, itemsize))


def _choose_row_panel(n: int, dtype, tile_budget_bytes: int) -> int:
    """Rows per (tm, N) panel.

    Small matrices: one full block (zero tiling overhead; pipelining irrelevant).
    Otherwise: largest sublane-multiple tm that fits the per-tile VMEM budget,
    gives at least _MIN_PANELS panels, and stays <= _MAX_PANEL_ROWS. The last
    panel may be ragged; Pallas masks its writeback.
    """
    itemsize = jnp.dtype(dtype).itemsize
    row_bytes = n * itemsize
    if n * row_bytes <= _SMALL_SINGLE_BLOCK_BYTES:
        return n                                   # single block == full array dims

    sub = _sublane_multiple(dtype)
    budget_rows = max(sub, tile_budget_bytes // max(1, row_bytes))
    target_rows = max(sub, -(-n // _MIN_PANELS))   # ceil(n / _MIN_PANELS)
    tm = min(budget_rows, target_rows, _MAX_PANEL_ROWS)
    tm = max(sub, (tm // sub) * sub)               # round down to sublane multiple
    return tm


def _impedance_kernel(gamma_ref, c_ref, o_ref):
    """One (tm, N) row panel: add eps on the diagonal, then x ** (-clamp(gamma))."""
    # Scalar prep on the scalar unit: clamp once, fold the negate into the scalar.
    neg_g = -jnp.clip(gamma_ref[0], 0.9, 1.0)

    tm, tn = c_ref.shape                # tn == N (full row width -> lane-dense stores)
    i = pl.program_id(0)

    x = c_ref[...]
    # Fused eye-mask + add as a single select (no eye materialization). For a
    # ragged last panel, padded rows have row >= N which can never equal a
    # valid col < N, so the select is a no-op there (and those rows are never
    # written back anyway).
    row = jax.lax.broadcasted_iota(jnp.int32, (tm, tn), 0) + i * tm
    col = jax.lax.broadcasted_iota(jnp.int32, (tm, tn), 1)
    x = jnp.where(row == col, x + jnp.asarray(1e-6, x.dtype), x)
    xf = x.astype(jnp.float32)

    is_recip = neg_g == jnp.float32(-1.0)

    @pl.when(is_recip)
    def _():
        # gamma == 1.0 (default init): x ** (-1) == 1/x. Exact reciprocal
        # (approx=False) to stay bit-close to the pow reference; skips log+exp.
        o_ref[...] = pl.reciprocal(xf, approx=False).astype(o_ref.dtype)

    @pl.when(jnp.logical_not(is_recip))
    def _():
        # x ** (-g) == exp(-g * log(x))  (EUP for log/exp, VPU for the scalar mul)
        o_ref[...] = jnp.exp(neg_g * jnp.log(xf)).astype(o_ref.dtype)


def impedance_layer(c_ij: jax.Array, gamma: jax.Array) -> jax.Array:
    """Pallas forward of ImpedanceLayer: (c + eps*I) ** (-clamp(gamma, 0.9, 1.0))."""
    n, n2 = c_ij.shape
    assert n == n2, "ImpedanceLayer expects a square matrix"

    tile_budget, vmem_limit = _vmem_params()
    tm = _choose_row_panel(n, c_ij.dtype, tile_budget)
    grid = (pl.cdiv(n, tm),)

    gamma_arr = jnp.asarray(gamma, jnp.float32).reshape((1,))

    grid_spec = pltpu.PrefetchScalarGridSpec(
        num_scalar_prefetch=1,
        grid=grid,
        # 1-D grid over lane-dense row panels; index_map gets the prefetch ref
        # as a trailing positional arg.
        in_specs=[pl.BlockSpec((tm, n), lambda i, g: (i, 0))],
        out_specs=pl.BlockSpec((tm, n), lambda i, g: (i, 0)),
    )

    return pl.pallas_call(
        _impedance_kernel,
        out_shape=jax.ShapeDtypeStruct((n, n), c_ij.dtype),
        grid_spec=grid_spec,
        compiler_params=pltpu.CompilerParams(
            dimension_semantics=("parallel",),   # row panels are independent
            vmem_limit_bytes=vmem_limit,
        ),
    )(gamma_arr, c_ij)


def impedance_layer_ref(c_ij: jax.Array, gamma: jax.Array):
    """Pure-JAX reference mirroring the PyTorch forward."""
    n = c_ij.shape[0]
    mask = jnp.eye(n, dtype=c_ij.dtype)
    c = c_ij + mask * 1e-6
    g = jnp.clip(jnp.asarray(gamma, jnp.float32), 0.9, 1.0)
    return jnp.power(c, -g)


if __name__ == "__main__":
    key = jax.random.PRNGKey(0)

    # --- Small matrix, default gamma (reciprocal fast path) -----------------
    n = 128
    # Strictly positive entries (impedance magnitudes) -- required for
    # fractional negative powers (matches torch.pow domain).
    c_ij = jax.random.uniform(key, (n, n), dtype=jnp.float32,
                              minval=0.1, maxval=2.0)
    gamma = jnp.float32(1.0)            # module default initial_gamma=1.0

    out = jax.block_until_ready(impedance_layer(c_ij, gamma))
    ref = impedance_layer_ref(c_ij, gamma)
    assert out.shape == (n, n) and out.dtype == jnp.float32
    assert jnp.allclose(out, ref, rtol=1e-5, atol=1e-5), "mismatch (gamma=1.0)"

    # --- Same matrix, general gamma (exp/log path) ---------------------------
    gamma2 = jnp.float32(0.95)
    out2 = jax.block_until_ready(impedance_layer(c_ij, gamma2))
    ref2 = impedance_layer_ref(c_ij, gamma2)
    assert jnp.allclose(out2, ref2, rtol=1e-5, atol=1e-5), "mismatch (gamma=0.95)"

    # --- Ragged tiled path: N not a multiple of the chosen panel size --------
    key2 = jax.random.PRNGKey(0)
    n3 = 520                            # > 1 MiB of f32 -> tiled; cdiv leaves a ragged last panel
    c3 = jax.random.uniform(key2, (n3, n3), dtype=jnp.float32,
                            minval=0.1, maxval=2.0)
    out3 = jax.block_until_ready(impedance_layer(c3, jnp.float32(0.97)))
    ref3 = impedance_layer_ref(c3, jnp.float32(0.97))
    assert jnp.allclose(out3, ref3, rtol=1e-5, atol=1e-5), "mismatch (ragged tiling)"

    print("KERNEL_OK")
</pallas_src>

<mosaic_0001>
module attributes {stable_mosaic.version = 11 : i64} {
  func.func @_impedance_kernel(%arg0: i32, %arg1: memref<1xf32, #tpu.memory_space<smem>>, %arg2: memref<128x128xf32, #tpu.memory_space<vmem>>, %arg3: memref<128x128xf32, #tpu.memory_space<vmem>>) attributes {dimension_semantics = [#tpu.dimension_semantics<parallel>], iteration_bounds = array<i64: 1>, scalar_prefetch = 1 : i64, scratch_operands = 0 : i64, tpu.core_type = #tpu.core_type<tc>, window_params = [{transform_indices = @transform_0, window_bounds = array<i64: 128, 128>}, {transform_indices = @transform_1, window_bounds = array<i64: 128, 128>}]} {
    %c0 = arith.constant 0 : index
    %0 = memref.load %arg1[%c0] : memref<1xf32, #tpu.memory_space<smem>>
    %cst = arith.constant 0.899999976 : f32
    %cst_0 = arith.constant 1.000000e+00 : f32
    %1 = arith.maximumf %cst, %0 : f32
    %2 = arith.minimumf %cst_0, %1 : f32
    %cst_1 = arith.constant 0.000000e+00 : f32
    %3 = arith.subf %cst_1, %2 : f32
    %c0_2 = arith.constant 0 : index
    %c0_3 = arith.constant 0 : index
    %4 = vector.load %arg2[%c0_2, %c0_3] : memref<128x128xf32, #tpu.memory_space<vmem>>, vector<128x128xf32>
    %5 = tpu.iota {dimensions = array<i32: 0>} : vector<128x128xi32>
    %c128_i32 = arith.constant 128 : i32
    %6 = arith.muli %arg0, %c128_i32 : i32
    %7 = vector.broadcast %6 : i32 to vector<128x128xi32>
    %8 = arith.addi %5, %7 : vector<128x128xi32>
    %9 = tpu.iota {dimensions = array<i32: 1>} : vector<128x128xi32>
    %10 = arith.cmpi eq, %8, %9 : vector<128x128xi32>
    %cst_4 = arith.constant 9.99999997E-7 : f32
    %11 = vector.broadcast %cst_4 : f32 to vector<128x128xf32>
    %12 = arith.addf %4, %11 : vector<128x128xf32>
    %13 = arith.select %10, %12, %4 : vector<128x128xi1>, vector<128x128xf32>
    %cst_5 = arith.constant -1.000000e+00 : f32
    %14 = arith.cmpf oeq, %3, %cst_5 : f32
    %15 = arith.extui %14 : i1 to i32
    %c0_i32 = arith.constant 0 : i32
    %16 = arith.cmpi ne, %15, %c0_i32 : i32
    scf.if %16 {
      %20 = tpu.reciprocal %13 : vector<128x128xf32> -> vector<128x128xf32>
      %c0_7 = arith.constant 0 : index
      %c0_8 = arith.constant 0 : index
      %21 = vector.load %arg3[%c0_7, %c0_8] : memref<128x128xf32, #tpu.memory_space<vmem>>, vector<128x128xf32>
      tpu.vector_store %arg3[%c0_7, %c0_8], %20 {strides = array<i32>} : memref<128x128xf32, #tpu.memory_space<vmem>>, vector<128x128xf32>,
    } else {
    }
    %true = arith.constant true
    %17 = arith.xori %14, %true : i1
    %18 = arith.extui %17 : i1 to i32
    %c0_i32_6 = arith.constant 0 : i32
    %19 = arith.cmpi ne, %18, %c0_i32_6 : i32
    scf.if %19 {
      %20 = math.log %13 : vector<128x128xf32>
      %21 = vector.broadcast %3 : f32 to vector<128x128xf32>
      %22 = arith.mulf %21, %20 : vector<128x128xf32>
      %23 = math.exp %22 : vector<128x128xf32>
      %c0_7 = arith.constant 0 : index
      %c0_8 = arith.constant 0 : index
      %24 = vector.load %arg3[%c0_7, %c0_8] : memref<128x128xf32, #tpu.memory_space<vmem>>, vector<128x128xf32>
      tpu.vector_store %arg3[%c0_7, %c0_8], %23 {strides = array<i32>} : memref<128x128xf32, #tpu.memory_space<vmem>>, vector<128x128xf32>,
    } else {
    }
    return
  }
  func.func @transform_0(%arg0: i32, %arg1: memref<1xf32, #tpu.memory_space<smem>>) -> (i32, i32) {
    %c0_i32 = arith.constant 0 : i32
    %c0_i32_0 = arith.constant 0 : i32
    return %arg0, %c0_i32 : i32, i32
  }
  func.func @transform_1(%arg0: i32, %arg1: memref<1xf32, #tpu.memory_space<smem>>) -> (i32, i32) {
    %c0_i32 = arith.constant 0 : i32
    %c0_i32_0 = arith.constant 0 : i32
    return %arg0, %c0_i32 : i32, i32
  }
}

</mosaic_0001>

<bundles_post_ra>
// kernel: tpu_custom_call.1
= control target key start
LH: loop header
LB: loop body
LE: loop exit
PB: predicated region body
PF: predicated region fallthrough
CT: control target
= control target key end

     0   :  { %8 = vsyncpa [#allocation5], 0  ;;  %s686_s0 = inlined_call_operand.<no memory space> [shape: f32[1], index: 0, kind: input, shape index: {}]   ;;  %s687_s1 = inlined_call_operand.hbm [shape: f32[128,128], index: 1, kind: input, shape index: {}]   ;;  %s688_s2 = inlined_call_operand.hbm [shape: f32[128,128], index: 2, kind: output, shape index: {}]  }
   0x1   :  { %9 = vsyncpa [#allocation6], 0  ;;  %s433_s9 = smov [#allocation4]   ;;  %s385_s13 = scalar_lea.hbm %s687_s1, 2048 }
   0x2   :  { %s15_s10 = sshll.u32 %s433_s9, 4  ;;  %p386_p0 = scmp.ne.s32.totalorder %s687_s1, %s385_s13  ;;  %s16_s10 = int_to_ptr.vmem [resolvable:$true] %s15_s10 }
   0x3   :  { %p389_p1 = scmp.lt.u32.totalorder %s385_s13, %s687_s1 }
   0x5   :  { %p391_p2 = pnand %p389_p1, %p386_p0 }
   0x7   :  { %394 = shalt.err (!%p391_p2)
}
   0x8   :  { %s395_s18 = scalar_lea.vmem %s16_s10, 2048  ;;  %p400_p4 = scmp.lt.s32.totalorder %s16_s10, %s16_s10 }
   0x9   :  { %p396_p3 = scmp.ne.s32.totalorder %s16_s10, %s395_s18  ;;  %p401_p5 = scmp.lt.s32.totalorder %s395_s18, %s395_s18 }
   0xb   :  { %p402_p6 = por %p401_p5, %p400_p4 }
   0xd   :  { %p403_p7 = pnand %p402_p6, %p396_p3 }
   0xf   :  { %406 = shalt.err (!%p403_p7)
}
  0x10   :  { %s434_s19 = smov 128   ;;  %s435_s20 = smov 8  }
  0x11   :  { %21 = dma.hbm_to_vmem [thread:$0]  %s687_s1, 2048, %s16_s10, [#allocation5], %s434_s19, %s434_s19, %s435_s20  }
  0x12   :  { %429 = dma.done.wait [#allocation5], 2048  }
  0x13   :  { %430 = vsyncadd [#allocation5], 4294965248  ;;  %v45_v0 = vlaneseq  ;;  %s436_s23 = smov 0.9   ;;  %s437_s27 = smov 1.0   ;;  %v29_v13 = vld [vmem:[#allocation4] sm:$0xff] }
  0x14   :  { %s26_s26 = smax.f32 %s436_s23, %s686_s0  ;;  %v30_v14 = vld [vmem:[#allocation4 + $0x8] sm:$0xff]  ;;  %v31_v19 = vld [vmem:[#allocation4 + $0x10] sm:$0xff]  ;;  %v32_v20 = vld [vmem:[#allocation4 + $0x18] sm:$0xff]  ;;  %v98_v32 = vadd.f32 1e-06, %v29_v13 }
  0x15   :  { %s472_s28 = smin.f32 %s437_s27, %s26_s26  ;;  %v46_v1 = vshrl.u32 %v45_v0, 7  ;;  %v477_v4 = vand.u32 127, %v45_v0  ;;  %v33_v21 = vld [vmem:[#allocation4 + $0x20] sm:$0xff]  ;;  %v34_v23 = vld [vmem:[#allocation4 + $0x28] sm:$0xff]  ;;  %v35_v24 = vld [vmem:[#allocation4 + $0x30] sm:$0xff] }
  0x16   :  { %s28_s29 = ssub.f32 0.0, %s472_s28  ;;  %v36_v25 = vld [vmem:[#allocation4 + $0x38] sm:$0xff]  ;;  %v37_v26 = vld [vmem:[#allocation4 + $0x40] sm:$0xff]  ;;  %v38_v27 = vld [vmem:[#allocation4 + $0x48] sm:$0xff]  ;;  %v99_v35 = vadd.f32 1e-06, %v30_v14 }
  0x17   :  { %v47_v2 = vadd.s32 8, %v46_v1  ;;  %v475_v3 = vadd.s32 16, %v46_v1  ;;  %v479_v5 = vadd.s32 24, %v46_v1  ;;  %v481_v6 = vadd.s32 32, %v46_v1  ;;  %v39_v28 = vld [vmem:[#allocation4 + $0x50] sm:$0xff]  ;;  %v40_v29 = vld [vmem:[#allocation4 + $0x58] sm:$0xff] }
  0x18   :  { %v483_v7 = vadd.s32 40, %v46_v1  ;;  %v485_v8 = vadd.s32 48, %v46_v1  ;;  %p489_p8 = scmp.eq.f32.partialorder %s28_s29, -1.0  ;;  %v493_v9 = vadd.s32 56, %v46_v1  ;;  %v495_v10 = vadd.s32 64, %v46_v1  ;;  %v41_v30 = vld [vmem:[#allocation4 + $0x60] sm:$0xff] }
  0x19   :  { %v497_v11 = vadd.s32 72, %v46_v1  ;;  %v499_v12 = vadd.s32 80, %v46_v1  ;;  %v501_v15 = vadd.s32 88, %v46_v1  ;;  %v503_v16 = vadd.s32 96, %v46_v1  ;;  %v42_v31 = vld [vmem:[#allocation4 + $0x68] sm:$0xff]  ;;  %v43_v33 = vld [vmem:[#allocation4 + $0x70] sm:$0xff] }
  0x1a   :  { %v505_v17 = vadd.s32 104, %v46_v1  ;;  %v507_v18 = vadd.s32 112, %v46_v1  ;;  %v61_v22 = vadd.s32 120, %v46_v1  ;;  %vm82_vm0 = vcmp.eq.s32.totalorder %v46_v1, %v477_v4  ;;  %v44_v34 = vld [vmem:[#allocation4 + $0x78] sm:$0xff] }
  0x1b   :  { %vm83_vm1 = vcmp.eq.s32.totalorder %v47_v2, %v477_v4  ;;  %vm84_vm2 = vcmp.eq.s32.totalorder %v475_v3, %v477_v4  ;;  %vm85_vm3 = vcmp.eq.s32.totalorder %v479_v5, %v477_v4  ;;  %vm86_vm4 = vcmp.eq.s32.totalorder %v481_v6, %v477_v4 }
  0x1c   :  { %vm87_vm5 = vcmp.eq.s32.totalorder %v483_v7, %v477_v4  ;;  %vm88_vm6 = vcmp.eq.s32.totalorder %v485_v8, %v477_v4  ;;  %vm89_vm7 = vcmp.eq.s32.totalorder %v493_v9, %v477_v4  ;;  %vm90_vm8 = vcmp.eq.s32.totalorder %v495_v10, %v477_v4 }
  0x1d   :  { %vm91_vm9 = vcmp.eq.s32.totalorder %v497_v11, %v477_v4  ;;  %vm92_vm10 = vcmp.eq.s32.totalorder %v499_v12, %v477_v4  ;;  %vm93_vm11 = vcmp.eq.s32.totalorder %v501_v15, %v477_v4  ;;  %vm94_vm12 = vcmp.eq.s32.totalorder %v503_v16, %v477_v4 }
  0x1e   :  { %vm95_vm13 = vcmp.eq.s32.totalorder %v505_v17, %v477_v4  ;;  %vm96_vm14 = vcmp.eq.s32.totalorder %v507_v18, %v477_v4  ;;  %vm97_vm15 = vcmp.eq.s32.totalorder %v61_v22, %v477_v4  ;;  %v100_v36 = vadd.f32 1e-06, %v31_v19 }
  0x1f   :  { %v101_v37 = vadd.f32 1e-06, %v32_v20  ;;  %v102_v38 = vadd.f32 1e-06, %v33_v21  ;;  %v103_v39 = vadd.f32 1e-06, %v34_v23  ;;  %v540_v40 = vsel %vm82_vm0, %v98_v32, %v29_v13 }
  0x20   :  { %v104_v41 = vadd.f32 1e-06, %v35_v24  ;;  %v105_v42 = vadd.f32 1e-06, %v36_v25  ;;  %v106_v43 = vadd.f32 1e-06, %v37_v26  ;;  %v544_v44 = vsel %vm83_vm1, %v99_v35, %v30_v14 }
  0x21   :  { %v107_v45 = vadd.f32 1e-06, %v38_v27  ;;  %v108_v46 = vadd.f32 1e-06, %v39_v28  ;;  %v109_v47 = vadd.f32 1e-06, %v40_v29  ;;  %v549_v48 = vsel %vm84_vm2, %v100_v36, %v31_v19 }
  0x22   :  { %v110_v49 = vadd.f32 1e-06, %v41_v30  ;;  %v111_v50 = vadd.f32 1e-06, %v42_v31  ;;  %v112_v51 = vadd.f32 1e-06, %v43_v33  ;;  %v554_v52 = vsel %vm85_vm3, %v101_v37, %v32_v20 }
  0x23   :  { %v113_v53 = vadd.f32 1e-06, %v44_v34  ;;  %v559_v54 = vsel %vm86_vm4, %v102_v38, %v33_v21  ;;  %v564_v55 = vsel %vm87_vm5, %v103_v39, %v34_v23  ;;  %v569_v56 = vsel %vm88_vm6, %v104_v41, %v35_v24  ;;  %133 = sbr.rel (!%p489_p8) target bundleno = 65 (0x41), region = 13 }
  0x24   :  { %v574_v57 = vsel %vm89_vm7, %v105_v42, %v36_v25  ;;  %v579_v58 = vsel %vm90_vm8, %v106_v43, %v37_v26  ;;  %v584_v59 = vsel %vm91_vm9, %v107_v45, %v38_v27  ;;  %v589_v60 = vsel %vm92_vm10, %v108_v46, %v39_v28 }
  0x25   :  { %v594_v61 = vsel %vm93_vm11, %v109_v47, %v40_v29  ;;  %v599_v62 = vsel %vm94_vm12, %v110_v49, %v41_v30  ;;  %v604_v63 = vsel %vm95_vm13, %v111_v50, %v42_v31  ;;  %v609_v0 = vsel %vm96_vm14, %v112_v51, %v43_v33 }
  0x26   :  { %v613_v1 = vsel %vm97_vm15, %v113_v53, %v44_v34  ;;  %289 = vrcp.f32 (%p489_p8), %v540_v40 }
  0x27   :  { %291 = vrcp.f32 (%p489_p8), %v544_v44 }
  0x28   :  { %293 = vrcp.f32 (%p489_p8), %v549_v48 }
  0x29   :  { %295 = vrcp.f32 (%p489_p8), %v554_v52 }
  0x2a   :  { %297 = vrcp.f32 %v559_v54 }
  0x2b   :  { %299 = vrcp.f32 %v564_v55 }
  0x2c   :  { %301 = vrcp.f32 %v569_v56 }
  0x2d   :  { %303 = vrcp.f32 %v574_v57 }
  0x2e   :  { %305 = vrcp.f32 %v579_v58 }
  0x2f   :  { %307 = vrcp.f32 %v584_v59 }
  0x30   :  { %v290_v2 = vpop.eup %289  ;;  %309 = vrcp.f32 %v589_v60 }
  0x31   :  { %v292_v3 = vpop.eup %291  ;;  %150 = vst [vmem:[#allocation7] sm:$0xff] %v290_v2  ;;  %311 = vrcp.f32 %v594_v61 }
  0x32   :  { %v294_v4 = vpop.eup %293  ;;  %151 = vst [vmem:[#allocation7 + $0x8] sm:$0xff] %v292_v3  ;;  %313 = vrcp.f32 %v599_v62 }
  0x33   :  { %v296_v5 = vpop.eup %295  ;;  %152 = vst [vmem:[#allocation7 + $0x10] sm:$0xff] %v294_v4  ;;  %315 = vrcp.f32 %v604_v63 }
  0x34   :  { %v298_v6 = vpop.eup %297  ;;  %153 = vst [vmem:[#allocation7 + $0x18] sm:$0xff] %v296_v5  ;;  %317 = vrcp.f32 %v609_v0 }
  0x35   :  { %v300_v7 = vpop.eup %299  ;;  %154 = vst [vmem:[#allocation7 + $0x20] sm:$0xff] %v298_v6  ;;  %319 = vrcp.f32 %v613_v1 }
  0x36   :  { %v302_v8 = vpop.eup %301  ;;  %155 = vst [vmem:[#allocation7 + $0x28] sm:$0xff] %v300_v7 }
  0x37   :  { %v304_v9 = vpop.eup %303  ;;  %156 = vst [vmem:[#allocation7 + $0x30] sm:$0xff] %v302_v8 }
  0x38   :  { %v306_v10 = vpop.eup %305  ;;  %157 = vst [vmem:[#allocation7 + $0x38] sm:$0xff] %v304_v9 }
  0x39   :  { %v308_v11 = vpop.eup %307  ;;  %158 = vst [vmem:[#allocation7 + $0x40] sm:$0xff] %v306_v10 }
  0x3a   :  { %v310_v12 = vpop.eup %309  ;;  %159 = vst [vmem:[#allocation7 + $0x48] sm:$0xff] %v308_v11 }
  0x3b   :  { %v312_v13 = vpop.eup %311  ;;  %160 = vst [vmem:[#allocation7 + $0x50] sm:$0xff] %v310_v12 }
  0x3c   :  { %v314_v14 = vpop.eup %313  ;;  %161 = vst [vmem:[#allocation7 + $0x58] sm:$0xff] %v312_v13 }
  0x3d   :  { %v316_v15 = vpop.eup %315  ;;  %162 = vst [vmem:[#allocation7 + $0x60] sm:$0xff] %v314_v14 }
  0x3e   :  { %v318_v16 = vpop.eup %317  ;;  %163 = vst [vmem:[#allocation7 + $0x68] sm:$0xff] %v316_v15 }
  0x3f   :  { %v320_v17 = vpop.eup %319  ;;  %164 = vst [vmem:[#allocation7 + $0x70] sm:$0xff] %v318_v16 }
  0x40   :  { %165 = vst [vmem:[#allocation7 + $0x78] sm:$0xff] %v320_v17 }
  0x41 PF:  { %168 = sbr.rel (%p489_p8) target bundleno = 109 (0x6d), region = 17  ;;  %321 = vlog2.f32 (!%p489_p8), %v540_v40  ;;  %v647_v19 = vstv (!%p489_p8), %s28_s29 }
  0x42   :  { %323 = vlog2.f32 (!%p489_p8), %v544_v44 }
  0x43   :  { %325 = vlog2.f32 (!%p489_p8), %v549_v48 }
  0x44   :  { %327 = vlog2.f32 (!%p489_p8), %v554_v52 }
  0x45   :  { %329 = vlog2.f32 (!%p489_p8), %v559_v54 }
  0x46   :  { %331 = vlog2.f32 (!%p489_p8), %v564_v55 }
  0x47   :  { %333 = vlog2.f32 (!%p489_p8), %v569_v56 }
  0x48   :  { %335 = vlog2.f32 %v574_v57 }
  0x49   :  { %337 = vlog2.f32 %v579_v58 }
  0x4a   :  { %339 = vlog2.f32 %v584_v59 }
  0x4b   :  { %v322_v18 = vpop.eup %321  ;;  %341 = vlog2.f32 %v589_v60 }
  0x4c   :  { %v324_v20 = vpop.eup %323  ;;  %v170_v21 = vmul.f32 0.6931472, %v322_v18  ;;  %343 = vlog2.f32 %v594_v61 }
  0x4d   :  { %v326_v22 = vpop.eup %325  ;;  %v172_v23 = vmul.f32 0.6931472, %v324_v20  ;;  %345 = vlog2.f32 %v599_v62 }
  0x4e   :  { %v328_v24 = vpop.eup %327  ;;  %v202_v25 = vmul.f32 %v647_v19, %v170_v21  ;;  %v174_v26 = vmul.f32 0.6931472, %v326_v22  ;;  %347 = vlog2.f32 %v604_v63 }
  0x4f   :  { %v330_v27 = vpop.eup %329  ;;  %v203_v28 = vmul.f32 %v647_v19, %v172_v23  ;;  %v176_v29 = vmul.f32 0.6931472, %v328_v24  ;;  %349 = vlog2.f32 %v609_v0 }
  0x50   :  { %v332_v30 = vpop.eup %331  ;;  %v218_v31 = vmul.f32 1.442695, %v202_v25  ;;  %v204_v32 = vmul.f32 %v647_v19, %v174_v26  ;;  %v178_v33 = vmul.f32 0.6931472, %v330_v27  ;;  %351 = vlog2.f32 %v613_v1 }
  0x51   :  { %v334_v34 = vpop.eup %333  ;;  %v220_v35 = vmul.f32 1.442695, %v203_v28  ;;  %v205_v36 = vmul.f32 %v647_v19, %v176_v29  ;;  %v180_v37 = vmul.f32 0.6931472, %v332_v30 }
  0x52   :  { %v336_v38 = vpop.eup %335  ;;  %353 = vpow2.f32 %v218_v31  ;;  %v222_v39 = vmul.f32 1.442695, %v204_v32  ;;  %v206_v40 = vmul.f32 %v647_v19, %v178_v33  ;;  %v182_v41 = vmul.f32 0.6931472, %v334_v34 }
  0x53   :  { %v338_v42 = vpop.eup %337  ;;  %355 = vpow2.f32 %v220_v35  ;;  %v224_v43 = vmul.f32 1.442695, %v205_v36  ;;  %v207_v44 = vmul.f32 %v647_v19, %v180_v37  ;;  %v184_v45 = vmul.f32 0.6931472, %v336_v38 }
  0x54   :  { %v340_v46 = vpop.eup %339  ;;  %357 = vpow2.f32 %v222_v39  ;;  %v226_v47 = vmul.f32 1.442695, %v206_v40  ;;  %v208_v48 = vmul.f32 %v647_v19, %v182_v41  ;;  %v186_v49 = vmul.f32 0.6931472, %v338_v42 }
  0x55   :  { %v342_v50 = vpop.eup %341  ;;  %359 = vpow2.f32 %v224_v43  ;;  %v228_v51 = vmul.f32 1.442695, %v207_v44  ;;  %v209_v52 = vmul.f32 %v647_v19, %v184_v45  ;;  %v188_v53 = vmul.f32 0.6931472, %v340_v46 }
  0x56   :  { %v344_v54 = vpop.eup %343  ;;  %361 = vpow2.f32 %v226_v47  ;;  %v230_v55 = vmul.f32 1.442695, %v208_v48  ;;  %v210_v56 = vmul.f32 %v647_v19, %v186_v49  ;;  %v190_v57 = vmul.f32 0.6931472, %v342_v50 }
  0x57   :  { %v346_v58 = vpop.eup %345  ;;  %363 = vpow2.f32 %v228_v51  ;;  %v232_v59 = vmul.f32 1.442695, %v209_v52  ;;  %v211_v60 = vmul.f32 %v647_v19, %v188_v53  ;;  %v192_v61 = vmul.f32 0.6931472, %v344_v54 }
  0x58   :  { %v348_v62 = vpop.eup %347  ;;  %365 = vpow2.f32 %v230_v55  ;;  %v234_v63 = vmul.f32 1.442695, %v210_v56  ;;  %v212_v0 = vmul.f32 %v647_v19, %v190_v57  ;;  %v194_v1 = vmul.f32 0.6931472, %v346_v58 }
  0x59   :  { %v350_v2 = vpop.eup %349  ;;  %367 = vpow2.f32 %v232_v59  ;;  %v236_v3 = vmul.f32 1.442695, %v211_v60  ;;  %v213_v4 = vmul.f32 %v647_v19, %v192_v61  ;;  %v196_v5 = vmul.f32 0.6931472, %v348_v62 }
  0x5a   :  { %v352_v6 = vpop.eup %351  ;;  %369 = vpow2.f32 %v234_v63  ;;  %v238_v7 = vmul.f32 1.442695, %v212_v0  ;;  %v214_v8 = vmul.f32 %v647_v19, %v194_v1  ;;  %v198_v9 = vmul.f32 0.6931472, %v350_v2 }
  0x5b   :  { %371 = vpow2.f32 %v236_v3  ;;  %v240_v10 = vmul.f32 1.442695, %v213_v4  ;;  %v215_v11 = vmul.f32 %v647_v19, %v196_v5  ;;  %v200_v12 = vmul.f32 0.6931472, %v352_v6 }
  0x5c   :  { %v354_v13 = vpop.eup %353  ;;  %373 = vpow2.f32 %v238_v7  ;;  %v242_v14 = vmul.f32 1.442695, %v214_v8  ;;  %v216_v15 = vmul.f32 %v647_v19, %v198_v9 }
  0x5d   :  { %v356_v16 = vpop.eup %355  ;;  %250 = vst [vmem:[#allocation7] sm:$0xff] %v354_v13  ;;  %375 = vpow2.f32 %v240_v10  ;;  %v244_v17 = vmul.f32 1.442695, %v215_v11  ;;  %v217_v18 = vmul.f32 %v647_v19, %v200_v12 }
  0x5e   :  { %v358_v20 = vpop.eup %357  ;;  %251 = vst [vmem:[#allocation7 + $0x8] sm:$0xff] %v356_v16  ;;  %377 = vpow2.f32 %v242_v14  ;;  %v246_v21 = vmul.f32 1.442695, %v216_v15 }
  0x5f   :  { %v360_v22 = vpop.eup %359  ;;  %252 = vst [vmem:[#allocation7 + $0x10] sm:$0xff] %v358_v20  ;;  %379 = vpow2.f32 %v244_v17  ;;  %v248_v23 = vmul.f32 1.442695, %v217_v18 }
  0x60   :  { %v362_v24 = vpop.eup %361  ;;  %253 = vst [vmem:[#allocation7 + $0x18] sm:$0xff] %v360_v22  ;;  %381 = vpow2.f32 %v246_v21 }
  0x61   :  { %v364_v25 = vpop.eup %363  ;;  %254 = vst [vmem:[#allocation7 + $0x20] sm:$0xff] %v362_v24  ;;  %383 = vpow2.f32 %v248_v23 }
  0x62   :  { %v366_v26 = vpop.eup %365  ;;  %255 = vst [vmem:[#allocation7 + $0x28] sm:$0xff] %v364_v25 }
  0x63   :  { %v368_v27 = vpop.eup %367  ;;  %256 = vst [vmem:[#allocation7 + $0x30] sm:$0xff] %v366_v26 }
  0x64   :  { %v370_v28 = vpop.eup %369  ;;  %257 = vst [vmem:[#allocation7 + $0x38] sm:$0xff] %v368_v27 }
  0x65   :  { %v372_v19 = vpop.eup %371  ;;  %258 = vst [vmem:[#allocation7 + $0x40] sm:$0xff] %v370_v28 }
  0x66   :  { %v374_v29 = vpop.eup %373  ;;  %259 = vst [vmem:[#allocation7 + $0x48] sm:$0xff] %v372_v19 }
  0x67   :  { %v376_v30 = vpop.eup %375  ;;  %260 = vst [vmem:[#allocation7 + $0x50] sm:$0xff] %v374_v29 }
  0x68   :  { %v378_v31 = vpop.eup %377  ;;  %261 = vst [vmem:[#allocation7 + $0x58] sm:$0xff] %v376_v30 }
  0x69   :  { %v380_v32 = vpop.eup %379  ;;  %262 = vst [vmem:[#allocation7 + $0x60] sm:$0xff] %v378_v31 }
  0x6a   :  { %v382_v33 = vpop.eup %381  ;;  %263 = vst [vmem:[#allocation7 + $0x68] sm:$0xff] %v380_v32 }
  0x6b   :  { %v384_v34 = vpop.eup %383  ;;  %264 = vst [vmem:[#allocation7 + $0x70] sm:$0xff] %v382_v33 }
  0x6c   :  { %265 = vst [vmem:[#allocation7 + $0x78] sm:$0xff] %v384_v34 }
  0x6d PF:  { %s438_s1 = smov [#allocation7]  }
  0x6e   :  { %s271_s30 = sshll.u32 %s438_s1, 4  ;;  %s272_s30 = int_to_ptr.vmem [resolvable:$true] %s271_s30 }
  0x6f   :  { %s407_s3 = scalar_lea.vmem %s272_s30, 2048  ;;  %p412_p10 = scmp.lt.s32.totalorder %s272_s30, %s272_s30 }
  0x70   :  { %p408_p9 = scmp.ne.s32.totalorder %s272_s30, %s407_s3  ;;  %p413_p11 = scmp.lt.s32.totalorder %s407_s3, %s407_s3 }
  0x72   :  { %p414_p12 = por %p413_p11, %p412_p10 }
  0x74   :  { %p415_p13 = pnand %p414_p12, %p408_p9 }
  0x76   :  { %418 = shalt.err (!%p415_p13)
}
  0x77   :  { %s419_s6 = scalar_lea.hbm %s688_s2, 2048 }
  0x78   :  { %p420_p0 = scmp.ne.s32.totalorder %s688_s2, %s419_s6  ;;  %p423_p1 = scmp.lt.u32.totalorder %s419_s6, %s688_s2 }
  0x7a   :  { %p425_p2 = pnand %p423_p1, %p420_p0 }
  0x7c   :  { %428 = shalt.err (!%p425_p2)
}
  0x7d   :  { %277 = dma.vmem_to_hbm [thread:$0]  %s272_s30, 2048, %s688_s2, [#allocation6], %s434_s19, %s434_s19, %s435_s20  }
  0x7e   :  { %431 = dma.done.wait [#allocation6], 2048  }
  0x7f   :  { %432 = vsyncadd [#allocation6], 4294965248 }
  0x80   :  { %281 = vsyncpa [#allocation5], 1 }
  0x81   :  { %282 = vsyncpa [#allocation6], 1 }

</bundles_post_ra>
